<compile_context>
chip_gen: v7x
topology: tpu7x:2x2x1
jax: 0.10.0
libtpu: 0.0.40
codegen_flags: <defaults>
</compile_context>

<pallas_src>
import functools

import jax
import jax.numpy as jnp
from jax import lax
from jax.experimental import pallas as pl
from jax.experimental.pallas import tpu as pltpu

PAD_IDX = 0


def _round_up(x, m):
    return ((x + m - 1) // m) * m


def _rnn_head_kernel(x_ref, whh_ref, wout_ref, bout_ref, out_ref, h_ref, *, n_class):
    """One (batch_block, time_chunk) grid step of the RNN recurrence + classifier head.

    x_ref:    (TT, BB, Hp)  projected inputs (W_ih and biases already folded in)
    whh_ref:  (Hp, Hp)      recurrent weight
    wout_ref: (Hp, Cp)      output Linear weight (f32)
    bout_ref: (1, Cp)       output Linear bias (f32)
    out_ref:  (BB, Cp)      log-probabilities (written on last time chunk)
    h_ref:    (BB, Hp)      persistent hidden state across time chunks (f32)
    """
    t_blk = pl.program_id(1)
    n_tblk = pl.num_programs(1)

    # h_0 = 0 at the start of each batch block's time sweep.
    @pl.when(t_blk == 0)
    def _():
        h_ref[...] = jnp.zeros_like(h_ref)

    whh = whh_ref[...]          # (Hp, Hp), compute dtype (f32 or bf16)
    h0 = h_ref[...]             # (BB, Hp), f32
    TT = x_ref.shape[0]

    def step(t, h):
        # Only the serial dependency lives in the loop: h = tanh(x_t + h @ W_hh).
        pre = (x_ref[t].astype(jnp.float32)
               + jnp.dot(h.astype(whh.dtype), whh,
                         preferred_element_type=jnp.float32))
        return jnp.tanh(pre)

    # Hidden state stays in vregs for the whole chunk; unrolled for LLO visibility.
    h = lax.fori_loop(0, TT, step, h0, unroll=True)
    h_ref[...] = h

    # Final Linear + log_softmax, only once, on the last time chunk.
    @pl.when(t_blk == n_tblk - 1)
    def _():
        logits = (jnp.dot(h, wout_ref[...], preferred_element_type=jnp.float32)
                  + bout_ref[...])                           # (BB, Cp) f32
        # Mask padded class lanes so they don't contaminate the softmax.
        col = lax.broadcasted_iota(jnp.int32, logits.shape, 1)
        logits = jnp.where(col < n_class, logits, -1e30)
        m = jnp.max(logits, axis=-1, keepdims=True)
        z = logits - m
        lse = jnp.log(jnp.sum(jnp.exp(z), axis=-1, keepdims=True))
        out_ref[...] = z - lse


def best_model_forward(seqs, params, *, compute_dtype=jnp.float32,
                       time_chunk=32, batch_block=None):
    """seqs: (B, T) int32.  Returns (B, n_class) float32 log-probs."""
    emb = params["embedding"]                    # (V, E)
    W_ih = params["W_ih"]                        # (E, H)
    W_hh = params["W_hh"]                        # (H, H)
    b_sum = params["b_ih"] + params["b_hh"]      # (1, H)  pre-summed biases
    W_out = params["W_out"]                      # (H, C)
    b_out = params["b_out"]                      # (1, C)

    B, T = seqs.shape
    H = W_hh.shape[0]
    C = W_out.shape[1]

    Hp = _round_up(H, 128)                       # lane-align hidden dim
    Cp = _round_up(C, 128)                       # lane-align class dim
    BB = batch_block or min(256, _round_up(B, 8))
    Bp = _round_up(B, BB)
    TT = min(time_chunk, T)
    Tp = _round_up(T, TT)

    # Fold input projection + both biases into the embedding table:
    # emb_proj[v] = emb[v] @ W_ih + (b_ih + b_hh).   (V, Hp), zero in padded lanes.
    emb_proj = emb.astype(jnp.float32) @ W_ih.astype(jnp.float32) + b_sum
    emb_proj = jnp.pad(emb_proj, ((0, 0), (0, Hp - H)))

    # Gather directly into time-major (T, B, Hp) — no activation transpose in HBM.
    x_proj = emb_proj[seqs.T]                    # (T, B, Hp)
    # Pad batch rows with zeros (inert: no bias -> h stays 0) and pad time at the
    # FRONT with zeros (h stays exactly 0 through the pad steps).
    x_proj = jnp.pad(x_proj, ((Tp - T, 0), (0, Bp - B), (0, 0)))
    x_proj = x_proj.astype(compute_dtype)

    W_hh_p = jnp.pad(W_hh, ((0, Hp - H), (0, Hp - H))).astype(compute_dtype)
    W_out_p = jnp.pad(W_out.astype(jnp.float32), ((0, Hp - H), (0, Cp - C)))
    b_out_p = jnp.pad(b_out.astype(jnp.float32), ((0, 0), (0, Cp - C)))

    nB = Bp // BB
    nT = Tp // TT

    itemsize = jnp.dtype(compute_dtype).itemsize
    cost = pl.CostEstimate(
        flops=int(2 * Tp * Bp * Hp * Hp + 2 * Bp * Hp * Cp),
        transcendentals=int(Tp * Bp * Hp + Bp * Cp),
        bytes_accessed=int(x_proj.size * itemsize + W_hh_p.size * itemsize
                           + W_out_p.size * 4 + b_out_p.size * 4 + Bp * Cp * 4),
    )

    kernel = functools.partial(_rnn_head_kernel, n_class=C)

    out = pl.pallas_call(
        kernel,
        out_shape=jax.ShapeDtypeStruct((Bp, Cp), jnp.float32),
        grid_spec=pltpu.PrefetchScalarGridSpec(
            num_scalar_prefetch=0,
            grid=(nB, nT),
            in_specs=[
                pl.BlockSpec((TT, BB, Hp), lambda b, t: (t, b, 0)),   # x_proj tiles
                pl.BlockSpec((Hp, Hp), lambda b, t: (0, 0)),          # W_hh
                pl.BlockSpec((Hp, Cp), lambda b, t: (0, 0)),          # W_out
                pl.BlockSpec((1, Cp), lambda b, t: (0, 0)),           # b_out
            ],
            out_specs=pl.BlockSpec((BB, Cp), lambda b, t: (b, 0)),    # resident over t
            scratch_shapes=[pltpu.VMEM((BB, Hp), jnp.float32)],       # hidden state
        ),
        compiler_params=pltpu.CompilerParams(
            dimension_semantics=("parallel", "arbitrary")),
        cost_estimate=cost,
    )(x_proj, W_hh_p, W_out_p, b_out_p)

    return out[:B, :C]


def init_params(key, vocab_size, n_class, emb_dim, hid):
    ks = jax.random.split(key, 7)
    scale_rnn = 1.0 / jnp.sqrt(hid)
    scale_lin = 1.0 / jnp.sqrt(hid)

    embedding = jax.random.normal(ks[0], (vocab_size, emb_dim), jnp.float32)
    embedding = embedding.at[PAD_IDX].set(0.0)   # padding_idx=PAD_IDX

    W_ih = jax.random.uniform(ks[1], (emb_dim, hid), jnp.float32, -scale_rnn, scale_rnn)
    W_hh = jax.random.uniform(ks[2], (hid, hid), jnp.float32, -scale_rnn, scale_rnn)
    b_ih = jax.random.uniform(ks[3], (1, hid), jnp.float32, -scale_rnn, scale_rnn)
    b_hh = jax.random.uniform(ks[4], (1, hid), jnp.float32, -scale_rnn, scale_rnn)
    W_out = jax.random.uniform(ks[5], (hid, n_class), jnp.float32, -scale_lin, scale_lin)
    b_out = jax.random.uniform(ks[6], (1, n_class), jnp.float32, -scale_lin, scale_lin)

    return dict(embedding=embedding, W_ih=W_ih, W_hh=W_hh,
                b_ih=b_ih, b_hh=b_hh, W_out=W_out, b_out=b_out)


if __name__ == "__main__":
    # Small deterministic config.
    vocab_size, n_class = 50, 4
    emb_dim, hid = 20, 32
    batch, max_len = 2, 8

    key = jax.random.PRNGKey(0)
    k_param, k_data = jax.random.split(key)

    params = init_params(k_param, vocab_size, n_class, emb_dim, hid)
    seqs = jax.random.randint(k_data, (batch, max_len), 0, vocab_size, dtype=jnp.int32)

    # f32 path (exact check against a pure-JAX reference).
    out = jax.block_until_ready(best_model_forward(seqs, params))

    def ref_forward(seqs, p):
        x = p["embedding"][seqs].transpose(1, 0, 2)      # (T, B, E)
        h = jnp.zeros((seqs.shape[0], hid), jnp.float32)
        for t in range(seqs.shape[1]):
            h = jnp.tanh(x[t] @ p["W_ih"] + h @ p["W_hh"] + p["b_ih"] + p["b_hh"])
        logits = h @ p["W_out"] + p["b_out"]
        return jax.nn.log_softmax(logits, axis=1)

    ref = ref_forward(seqs, params)
    assert out.shape == (batch, n_class)
    assert jnp.allclose(out, ref, atol=1e-5, rtol=1e-5), (out, ref)

    # bf16 MXU path (matmul inputs in bf16; f32 accumulation, f32 tanh/softmax).
    out_bf16 = jax.block_until_ready(
        best_model_forward(seqs, params, compute_dtype=jnp.bfloat16))
    assert out_bf16.shape == (batch, n_class)
    assert jnp.allclose(out_bf16, ref, atol=2e-1, rtol=2e-1), (out_bf16, ref)

    print("KERNEL_OK")
</pallas_src>

<mosaic_0001>
module attributes {stable_mosaic.version = 11 : i64} {
  func.func @_rnn_head_kernel(%arg0: i32, %arg1: i32, %arg2: memref<8x8x128xf32, #tpu.memory_space<vmem>>, %arg3: memref<128x128xf32, #tpu.memory_space<vmem>>, %arg4: memref<128x128xf32, #tpu.memory_space<vmem>>, %arg5: memref<1x128xf32, #tpu.memory_space<vmem>>, %arg6: memref<8x128xf32, #tpu.memory_space<vmem>>, %arg7: memref<8x128xf32, #tpu.memory_space<vmem>>) attributes {dimension_semantics = [#tpu.dimension_semantics<parallel>, #tpu.dimension_semantics<arbitrary>], iteration_bounds = array<i64: 1, 1>, scalar_prefetch = 0 : i64, scratch_operands = 1 : i64, tpu.core_type = #tpu.core_type<tc>, window_params = [{transform_indices = @transform_0, window_bounds = array<i64: 8, 8, 128>}, {pipeline_mode = #tpu.pipeline_mode<synchronous>, transform_indices = @transform_1, window_bounds = array<i64: 128, 128>}, {pipeline_mode = #tpu.pipeline_mode<synchronous>, transform_indices = @transform_2, window_bounds = array<i64: 128, 128>}, {pipeline_mode = #tpu.pipeline_mode<synchronous>, transform_indices = @transform_3, window_bounds = array<i64: 1, 128>}, {transform_indices = @transform_4, window_bounds = array<i64: 8, 128>}]} {
    %c0_i32 = arith.constant 0 : i32
    %0 = arith.cmpi eq, %arg1, %c0_i32 : i32
    %1 = arith.extui %0 : i1 to i32
    %c0_i32_0 = arith.constant 0 : i32
    %2 = arith.cmpi ne, %1, %c0_i32_0 : i32
    scf.if %2 {
      %cst_32 = arith.constant 0.000000e+00 : f32
      %57 = vector.broadcast %cst_32 : f32 to vector<8x128xf32>
      %c0_33 = arith.constant 0 : index
      %c0_34 = arith.constant 0 : index
      %58 = vector.load %arg7[%c0_33, %c0_34] : memref<8x128xf32, #tpu.memory_space<vmem>>, vector<8x128xf32>
      tpu.vector_store %arg7[%c0_33, %c0_34], %57 {strides = array<i32>} : memref<8x128xf32, #tpu.memory_space<vmem>>, vector<8x128xf32>,
    } else {
    }
    %c0 = arith.constant 0 : index
    %c0_1 = arith.constant 0 : index
    %3 = vector.load %arg3[%c0, %c0_1] : memref<128x128xf32, #tpu.memory_space<vmem>>, vector<128x128xf32>
    %c0_2 = arith.constant 0 : index
    %c0_3 = arith.constant 0 : index
    %4 = vector.load %arg7[%c0_2, %c0_3] : memref<8x128xf32, #tpu.memory_space<vmem>>, vector<8x128xf32>
    %c0_i32_4 = arith.constant 0 : i32
    %5 = arith.index_cast %c0_i32_4 : i32 to index
    %c0_5 = arith.constant 0 : index
    %c0_6 = arith.constant 0 : index
    %6 = vector.load %arg2[%5, %c0_5, %c0_6] : memref<8x8x128xf32, #tpu.memory_space<vmem>>, vector<1x8x128xf32>
    %7 = vector.shape_cast %6 : vector<1x8x128xf32> to vector<8x128xf32>
    %cst = arith.constant dense<0.000000e+00> : vector<8x128xf32>
    %8 = tpu.matmul %4, %3, %cst {dimension_numbers = #tpu.dot_dimension_numbers<[1], [0], [0], [1], [0, 0, 1, 1], [], []>} : vector<8x128xf32>, vector<128x128xf32>, vector<8x128xf32> -> vector<8x128xf32>
    %9 = arith.addf %7, %8 : vector<8x128xf32>
    %10 = math.tanh %9 : vector<8x128xf32>
    %c1_i32 = arith.constant 1 : i32
    %11 = arith.index_cast %c1_i32 : i32 to index
    %c0_7 = arith.constant 0 : index
    %c0_8 = arith.constant 0 : index
    %12 = vector.load %arg2[%11, %c0_7, %c0_8] : memref<8x8x128xf32, #tpu.memory_space<vmem>>, vector<1x8x128xf32>
    %13 = vector.shape_cast %12 : vector<1x8x128xf32> to vector<8x128xf32>
    %cst_9 = arith.constant dense<0.000000e+00> : vector<8x128xf32>
    %14 = tpu.matmul %10, %3, %cst_9 {dimension_numbers = #tpu.dot_dimension_numbers<[1], [0], [0], [1], [0, 0, 1, 1], [], []>} : vector<8x128xf32>, vector<128x128xf32>, vector<8x128xf32> -> vector<8x128xf32>
    %15 = arith.addf %13, %14 : vector<8x128xf32>
    %16 = math.tanh %15 : vector<8x128xf32>
    %c2_i32 = arith.constant 2 : i32
    %17 = arith.index_cast %c2_i32 : i32 to index
    %c0_10 = arith.constant 0 : index
    %c0_11 = arith.constant 0 : index
    %18 = vector.load %arg2[%17, %c0_10, %c0_11] : memref<8x8x128xf32, #tpu.memory_space<vmem>>, vector<1x8x128xf32>
    %19 = vector.shape_cast %18 : vector<1x8x128xf32> to vector<8x128xf32>
    %cst_12 = arith.constant dense<0.000000e+00> : vector<8x128xf32>
    %20 = tpu.matmul %16, %3, %cst_12 {dimension_numbers = #tpu.dot_dimension_numbers<[1], [0], [0], [1], [0, 0, 1, 1], [], []>} : vector<8x128xf32>, vector<128x128xf32>, vector<8x128xf32> -> vector<8x128xf32>
    %21 = arith.addf %19, %20 : vector<8x128xf32>
    %22 = math.tanh %21 : vector<8x128xf32>
    %c3_i32 = arith.constant 3 : i32
    %23 = arith.index_cast %c3_i32 : i32 to index
    %c0_13 = arith.constant 0 : index
    %c0_14 = arith.constant 0 : index
    %24 = vector.load %arg2[%23, %c0_13, %c0_14] : memref<8x8x128xf32, #tpu.memory_space<vmem>>, vector<1x8x128xf32>
    %25 = vector.shape_cast %24 : vector<1x8x128xf32> to vector<8x128xf32>
    %cst_15 = arith.constant dense<0.000000e+00> : vector<8x128xf32>
    %26 = tpu.matmul %22, %3, %cst_15 {dimension_numbers = #tpu.dot_dimension_numbers<[1], [0], [0], [1], [0, 0, 1, 1], [], []>} : vector<8x128xf32>, vector<128x128xf32>, vector<8x128xf32> -> vector<8x128xf32>
    %27 = arith.addf %25, %26 : vector<8x128xf32>
    %28 = math.tanh %27 : vector<8x128xf32>
    %c4_i32 = arith.constant 4 : i32
    %29 = arith.index_cast %c4_i32 : i32 to index
    %c0_16 = arith.constant 0 : index
    %c0_17 = arith.constant 0 : index
    %30 = vector.load %arg2[%29, %c0_16, %c0_17] : memref<8x8x128xf32, #tpu.memory_space<vmem>>, vector<1x8x128xf32>
    %31 = vector.shape_cast %30 : vector<1x8x128xf32> to vector<8x128xf32>
    %cst_18 = arith.constant dense<0.000000e+00> : vector<8x128xf32>
    %32 = tpu.matmul %28, %3, %cst_18 {dimension_numbers = #tpu.dot_dimension_numbers<[1], [0], [0], [1], [0, 0, 1, 1], [], []>} : vector<8x128xf32>, vector<128x128xf32>, vector<8x128xf32> -> vector<8x128xf32>
    %33 = arith.addf %31, %32 : vector<8x128xf32>
    %34 = math.tanh %33 : vector<8x128xf32>
    %c5_i32 = arith.constant 5 : i32
    %35 = arith.index_cast %c5_i32 : i32 to index
    %c0_19 = arith.constant 0 : index
    %c0_20 = arith.constant 0 : index
    %36 = vector.load %arg2[%35, %c0_19, %c0_20] : memref<8x8x128xf32, #tpu.memory_space<vmem>>, vector<1x8x128xf32>
    %37 = vector.shape_cast %36 : vector<1x8x128xf32> to vector<8x128xf32>
    %cst_21 = arith.constant dense<0.000000e+00> : vector<8x128xf32>
    %38 = tpu.matmul %34, %3, %cst_21 {dimension_numbers = #tpu.dot_dimension_numbers<[1], [0], [0], [1], [0, 0, 1, 1], [], []>} : vector<8x128xf32>, vector<128x128xf32>, vector<8x128xf32> -> vector<8x128xf32>
    %39 = arith.addf %37, %38 : vector<8x128xf32>
    %40 = math.tanh %39 : vector<8x128xf32>
    %c6_i32 = arith.constant 6 : i32
    %41 = arith.index_cast %c6_i32 : i32 to index
    %c0_22 = arith.constant 0 : index
    %c0_23 = arith.constant 0 : index
    %42 = vector.load %arg2[%41, %c0_22, %c0_23] : memref<8x8x128xf32, #tpu.memory_space<vmem>>, vector<1x8x128xf32>
    %43 = vector.shape_cast %42 : vector<1x8x128xf32> to vector<8x128xf32>
    %cst_24 = arith.constant dense<0.000000e+00> : vector<8x128xf32>
    %44 = tpu.matmul %40, %3, %cst_24 {dimension_numbers = #tpu.dot_dimension_numbers<[1], [0], [0], [1], [0, 0, 1, 1], [], []>} : vector<8x128xf32>, vector<128x128xf32>, vector<8x128xf32> -> vector<8x128xf32>
    %45 = arith.addf %43, %44 : vector<8x128xf32>
    %46 = math.tanh %45 : vector<8x128xf32>
    %c7_i32 = arith.constant 7 : i32
    %47 = arith.index_cast %c7_i32 : i32 to index
    %c0_25 = arith.constant 0 : index
    %c0_26 = arith.constant 0 : index
    %48 = vector.load %arg2[%47, %c0_25, %c0_26] : memref<8x8x128xf32, #tpu.memory_space<vmem>>, vector<1x8x128xf32>
    %49 = vector.shape_cast %48 : vector<1x8x128xf32> to vector<8x128xf32>
    %cst_27 = arith.constant dense<0.000000e+00> : vector<8x128xf32>
    %50 = tpu.matmul %46, %3, %cst_27 {dimension_numbers = #tpu.dot_dimension_numbers<[1], [0], [0], [1], [0, 0, 1, 1], [], []>} : vector<8x128xf32>, vector<128x128xf32>, vector<8x128xf32> -> vector<8x128xf32>
    %51 = arith.addf %49, %50 : vector<8x128xf32>
    %52 = math.tanh %51 : vector<8x128xf32>
    %c8_i32 = arith.constant 8 : i32
    %c0_28 = arith.constant 0 : index
    %c0_29 = arith.constant 0 : index
    %53 = vector.load %arg7[%c0_28, %c0_29] : memref<8x128xf32, #tpu.memory_space<vmem>>, vector<8x128xf32>
    tpu.vector_store %arg7[%c0_28, %c0_29], %52 {strides = array<i32>} : memref<8x128xf32, #tpu.memory_space<vmem>>, vector<8x128xf32>,
    %c0_i32_30 = arith.constant 0 : i32
    %54 = arith.cmpi eq, %arg1, %c0_i32_30 : i32
    %55 = arith.extui %54 : i1 to i32
    %c0_i32_31 = arith.constant 0 : i32
    %56 = arith.cmpi ne, %55, %c0_i32_31 : i32
    scf.if %56 {
      %c0_32 = arith.constant 0 : index
      %c0_33 = arith.constant 0 : index
      %57 = vector.load %arg4[%c0_32, %c0_33] : memref<128x128xf32, #tpu.memory_space<vmem>>, vector<128x128xf32>
      %cst_34 = arith.constant dense<0.000000e+00> : vector<8x128xf32>
      %58 = tpu.matmul %52, %57, %cst_34 {dimension_numbers = #tpu.dot_dimension_numbers<[1], [0], [0], [1], [0, 0, 1, 1], [], []>} : vector<8x128xf32>, vector<128x128xf32>, vector<8x128xf32> -> vector<8x128xf32>
      %c0_35 = arith.constant 0 : index
      %c0_36 = arith.constant 0 : index
      %59 = vector.load %arg5[%c0_35, %c0_36] : memref<1x128xf32, #tpu.memory_space<vmem>>, vector<1x128xf32>
      %60 = vector.broadcast %59 : vector<1x128xf32> to vector<8x128xf32>
      %61 = arith.addf %58, %60 : vector<8x128xf32>
      %62 = tpu.iota {dimensions = array<i32: 1>} : vector<8x128xi32>
      %c4_i32_37 = arith.constant 4 : i32
      %63 = vector.broadcast %c4_i32_37 : i32 to vector<8x128xi32>
      %64 = arith.cmpi slt, %62, %63 : vector<8x128xi32>
      %cst_38 = arith.constant -1.000000e+30 : f32
      %65 = vector.broadcast %cst_38 : f32 to vector<8x128xf32>
      %66 = arith.select %64, %61, %65 : vector<8x128xi1>, vector<8x128xf32>
      %cst_39 = arith.constant dense<0xFF800000> : vector<8xf32>
      %67 = vector.multi_reduction <maximumf>, %66, %cst_39 [1] : vector<8x128xf32> to vector<8xf32>
      %68 = vector.shape_cast %67 : vector<8xf32> to vector<8x1xf32>
      %69 = vector.broadcast %68 : vector<8x1xf32> to vector<8x128xf32>
      %70 = arith.subf %66, %69 : vector<8x128xf32>
      %71 = math.exp %70 : vector<8x128xf32>
      %cst_40 = arith.constant dense<0.000000e+00> : vector<8xf32>
      %72 = vector.multi_reduction <add>, %71, %cst_40 [1] : vector<8x128xf32> to vector<8xf32>
      %73 = vector.shape_cast %72 : vector<8xf32> to vector<8x1xf32>
      %74 = math.log %73 : vector<8x1xf32>
      %75 = vector.broadcast %74 : vector<8x1xf32> to vector<8x128xf32>
      %76 = arith.subf %70, %75 : vector<8x128xf32>
      %c0_41 = arith.constant 0 : index
      %c0_42 = arith.constant 0 : index
      %77 = vector.load %arg6[%c0_41, %c0_42] : memref<8x128xf32, #tpu.memory_space<vmem>>, vector<8x128xf32>
      tpu.vector_store %arg6[%c0_41, %c0_42], %76 {strides = array<i32>} : memref<8x128xf32, #tpu.memory_space<vmem>>, vector<8x128xf32>,
    } else {
    }
    return
  }
  func.func @transform_0(%arg0: i32, %arg1: i32) -> (i32, i32, i32) {
    %c0_i32 = arith.constant 0 : i32
    %c0_i32_0 = arith.constant 0 : i32
    return %arg1, %arg0, %c0_i32 : i32, i32, i32
  }
  func.func @transform_1(%arg0: i32, %arg1: i32) -> (i32, i32) {
    %c0_i32 = arith.constant 0 : i32
    %c0_i32_0 = arith.constant 0 : i32
    %c0_i32_1 = arith.constant 0 : i32
    return %c0_i32, %c0_i32_0 : i32, i32
  }
  func.func @transform_2(%arg0: i32, %arg1: i32) -> (i32, i32) {
    %c0_i32 = arith.constant 0 : i32
    %c0_i32_0 = arith.constant 0 : i32
    %c0_i32_1 = arith.constant 0 : i32
    return %c0_i32, %c0_i32_0 : i32, i32
  }
  func.func @transform_3(%arg0: i32, %arg1: i32) -> (i32, i32) {
    %c0_i32 = arith.constant 0 : i32
    %c0_i32_0 = arith.constant 0 : i32
    %c0_i32_1 = arith.constant 0 : i32
    return %c0_i32, %c0_i32_0 : i32, i32
  }
  func.func @transform_4(%arg0: i32, %arg1: i32) -> (i32, i32) {
    %c0_i32 = arith.constant 0 : i32
    %c0_i32_0 = arith.constant 0 : i32
    return %arg0, %c0_i32 : i32, i32
  }
}

</mosaic_0001>

<bundles_post_ra>
// kernel: tpu_custom_call.1
= control target key start
LH: loop header
LB: loop body
LE: loop exit
PB: predicated region body
PF: predicated region fallthrough
CT: control target
= control target key end

     0   :  { %9 = vsyncpa [#allocation4], 0  ;;  %s1880_s0 = inlined_call_operand.hbm [shape: f32[8,8,128], index: 0, kind: input, shape index: {}]   ;;  %s1881_s1 = inlined_call_operand.hbm [shape: f32[128,128], index: 1, kind: input, shape index: {}]   ;;  %s1882_s2 = inlined_call_operand.hbm [shape: f32[128,128], index: 2, kind: input, shape index: {}]   ;;  %s1883_s3 = inlined_call_operand.vmem [shape: f32[1,128], index: 3, kind: input, shape index: {}]   ;;  %s1884_s4 = inlined_call_operand.hbm [shape: f32[8,128], index: 4, kind: output, shape index: {}]  }
   0x1   :  { %10 = vsyncpa [#allocation7], 0 }
   0x2   :  { %11 = vsyncpa [#allocation5], 0  ;;  %s1608_s15 = smov [#allocation6]   ;;  %s1609_s17 = smov [#allocation3]  }
   0x3   :  { %s29_s16 = sshll.u32 %s1608_s15, 4  ;;  %s17_s18 = sshll.u32 %s1609_s17, 4  ;;  %s30_s16 = int_to_ptr.vmem [resolvable:$true] %s29_s16  ;;  %s1642_s18 = int_to_ptr.vmem [resolvable:$true] %s17_s18 }
   0x4   :  { %s1514_s21 = scalar_lea.hbm %s1881_s1, 2048 }
   0x5   :  { %p1515_p0 = scmp.ne.s32.totalorder %s1881_s1, %s1514_s21  ;;  %p1518_p1 = scmp.lt.u32.totalorder %s1514_s21, %s1881_s1 }
   0x7   :  { %p1520_p2 = pnand %p1518_p1, %p1515_p0 }
   0x9   :  { %1523 = shalt.err (!%p1520_p2)
}
   0xa   :  { %s1524_s26 = scalar_lea.vmem %s30_s16, 2048  ;;  %p1529_p4 = scmp.lt.s32.totalorder %s30_s16, %s30_s16 }
   0xb   :  { %p1525_p3 = scmp.ne.s32.totalorder %s30_s16, %s1524_s26  ;;  %p1530_p5 = scmp.lt.s32.totalorder %s1524_s26, %s1524_s26 }
   0xd   :  { %p1531_p6 = por %p1530_p5, %p1529_p4 }
   0xf   :  { %p1532_p7 = pnand %p1531_p6, %p1525_p3 }
  0x11   :  { %1535 = shalt.err (!%p1532_p7)
}
  0x12   :  { %s1610_s27 = smov 128   ;;  %s1611_s28 = smov 8  }
  0x13   :  { %35 = dma.hbm_to_vmem [thread:$0]  %s1881_s1, 2048, %s30_s16, [#allocation7], %s1610_s27, %s1610_s27, %s1611_s28  }
  0x14   :  { %s1536_s7 = scalar_lea.hbm %s1880_s0, 1024 }
  0x15   :  { %p1537_p8 = scmp.ne.s32.totalorder %s1880_s0, %s1536_s7  ;;  %p1540_p9 = scmp.lt.u32.totalorder %s1536_s7, %s1880_s0 }
  0x17   :  { %p1542_p10 = pnand %p1540_p9, %p1537_p8 }
  0x19   :  { %1545 = shalt.err (!%p1542_p10)
}
  0x1a   :  { %s1546_s12 = scalar_lea.vmem %s1642_s18, 1024  ;;  %p1551_p12 = scmp.lt.s32.totalorder %s1642_s18, %s1642_s18 }
  0x1b   :  { %p1547_p11 = scmp.ne.s32.totalorder %s1642_s18, %s1546_s12  ;;  %p1552_p13 = scmp.lt.s32.totalorder %s1546_s12, %s1546_s12 }
  0x1d   :  { %p1553_p0 = por %p1552_p13, %p1551_p12 }
  0x1f   :  { %p1554_p1 = pnand %p1553_p0, %p1547_p11 }
  0x21   :  { %1557 = shalt.err (!%p1554_p1)
}
  0x22   :  { %23 = dma.hbm_to_vmem [thread:$0]  %s1880_s0, 1024, %s1642_s18, [#allocation4], %s1610_s27, %s1610_s27, %s1611_s28  }
  0x23   :  { %s1612_s14 = smov [#allocation8]   ;;  %s1558_s19 = scalar_lea.hbm %s1882_s2, 2048 }
  0x24   :  { %s41_s15 = sshll.u32 %s1612_s14, 4  ;;  %p1559_p2 = scmp.ne.s32.totalorder %s1882_s2, %s1558_s19  ;;  %s42_s15 = int_to_ptr.vmem [resolvable:$true] %s41_s15 }
  0x25   :  { %p1562_p3 = scmp.lt.u32.totalorder %s1558_s19, %s1882_s2 }
  0x27   :  { %p1564_p4 = pnand %p1562_p3, %p1559_p2 }
  0x29   :  { %1567 = shalt.err (!%p1564_p4)
}
  0x2a   :  { %s1568_s24 = scalar_lea.vmem %s42_s15, 2048  ;;  %p1573_p6 = scmp.lt.s32.totalorder %s42_s15, %s42_s15 }
  0x2b   :  { %p1569_p5 = scmp.ne.s32.totalorder %s42_s15, %s1568_s24  ;;  %p1574_p7 = scmp.lt.s32.totalorder %s1568_s24, %s1568_s24 }
  0x2d   :  { %p1575_p8 = por %p1574_p7, %p1573_p6 }
  0x2f   :  { %p1576_p9 = pnand %p1575_p8, %p1569_p5 }
  0x31   :  { %1579 = shalt.err (!%p1576_p9)
}
  0x32   :  { %47 = dma.hbm_to_vmem [thread:$0]  %s1882_s2, 2048, %s42_s15, [#allocation7], %s1610_s27, %s1610_s27, %s1611_s28  }
  0x33   :  { %1602 = dma.done.wait [#allocation4], 1024  }
  0x34   :  { %1603 = vsyncadd [#allocation4], 4294966272 }
  0x35   :  { %1604 = dma.done.wait [#allocation7], 4096  }
  0x36   :  { %1605 = vsyncadd [#allocation7], 4294963200  ;;  %v1613_v0 = vmov 0.0|0.0   ;;  %vm1614_vm0 = vmmov 0   ;;  %v1615_v1 = vmov 0.0   ;;  %v64_v2 = vld [vmem:[#allocation6] sm:$0xff] }
  0x37   :  { %1269 = vmatprep.subr.bf16.mxu0 %v1613_v0  ;;  %986 = vmatprep.mubr.msk.f32.mxu0 %vm1614_vm0, %v1615_v1  ;;  %v65_v3 = vld [vmem:[#allocation6 + $0x8] sm:$0xff]  ;;  %v66_v4 = vld [vmem:[#allocation6 + $0x10] sm:$0xff]  ;;  %v67_v6 = vld [vmem:[#allocation6 + $0x18] sm:$0xff]  ;;  %s1616_s26 = smov [#allocation9]  }
  0x38   :  { %1293 = vmatprep.subr.bf16.mxu1 %v1613_v0  ;;  %1021 = vmatprep.mubr.msk.f32.mxu1 %vm1614_vm0, %v1615_v1  ;;  %v1700_v5 = vpack.c.bf16 %v65_v3, %v64_v2  ;;  %v1703_v7 = vpack.c.bf16 %v67_v6, %v66_v4  ;;  %v68_v8 = vld [vmem:[#allocation6 + $0x20] sm:$0xff]  ;;  %v69_v9 = vld [vmem:[#allocation6 + $0x28] sm:$0xff]  ;;  %v70_v11 = vld [vmem:[#allocation6 + $0x30] sm:$0xff]  ;;  %s790_s27 = sshll.u32 %s1616_s26, 4  ;;  %s791_s27 = int_to_ptr.vmem [resolvable:$true] %s790_s27 }
  0x39   :  { %v1709_v10 = vpack.c.bf16 %v69_v9, %v68_v8  ;;  %v71_v12 = vld [vmem:[#allocation6 + $0x38] sm:$0xff]  ;;  %v72_v14 = vld [vmem:[#allocation6 + $0x40] sm:$0xff]  ;;  %v73_v15 = vld [vmem:[#allocation6 + $0x48] sm:$0xff]  ;;  %p1585_p11 = scmp.lt.s32.totalorder %s791_s27, %s791_s27 }
  0x3a   :  { %1271 = vmatpush3.bf16.msra.mxu0 %v1700_v5  ;;  %1295 = vmatpush3.bf16.msra.mxu1 %v1700_v5  ;;  %v1715_v13 = vpack.c.bf16 %v71_v12, %v70_v11  ;;  %v1721_v16 = vpack.c.bf16 %v73_v15, %v72_v14  ;;  %v74_v17 = vld [vmem:[#allocation6 + $0x50] sm:$0xff]  ;;  %v75_v18 = vld [vmem:[#allocation6 + $0x58] sm:$0xff]  ;;  %v76_v20 = vld [vmem:[#allocation6 + $0x60] sm:$0xff] }
  0x3b   :  { %1272 = vmatprep.subr.bf16.mxu0 %v1613_v0  ;;  %1296 = vmatprep.subr.bf16.mxu1 %v1613_v0  ;;  %v1727_v19 = vpack.c.bf16 %v75_v18, %v74_v17  ;;  %v77_v21 = vld [vmem:[#allocation6 + $0x68] sm:$0xff]  ;;  %v78_v23 = vld [vmem:[#allocation6 + $0x70] sm:$0xff]  ;;  %v79_v24 = vld [vmem:[#allocation6 + $0x78] sm:$0xff] }
  0x3c   :  { %v1733_v22 = vpack.c.bf16 %v77_v21, %v76_v20  ;;  %v1739_v25 = vpack.c.bf16 %v79_v24, %v78_v23  ;;  %v81_v26 = vld [vmem:[#allocation3] sm:$0xff]  ;;  %v155_v31 = vld [vmem:[#allocation3 + $0x8] sm:$0xff]  ;;  %v229_v36 = vld [vmem:[#allocation3 + $0x10] sm:$0xff] }
  0x3d   :  { %v303_v41 = vld [vmem:[#allocation3 + $0x18] sm:$0xff]  ;;  %v377_v46 = vld [vmem:[#allocation3 + $0x20] sm:$0xff]  ;;  %v451_v51 = vld [vmem:[#allocation3 + $0x28] sm:$0xff] }
  0x3e   :  { %1274 = vmatpush3.bf16.msra.mxu0 %v1703_v7  ;;  %1298 = vmatpush3.bf16.msra.mxu1 %v1703_v7  ;;  %v676_v56 = vld [vmem:[#allocation8] sm:$0xff]  ;;  %v677_v57 = vld [vmem:[#allocation8 + $0x8] sm:$0xff]  ;;  %v678_v58 = vld [vmem:[#allocation8 + $0x10] sm:$0xff] }
  0x3f   :  { %1275 = vmatprep.subr.bf16.mxu0 %v1613_v0  ;;  %1299 = vmatprep.subr.bf16.mxu1 %v1613_v0  ;;  %v1462_v59 = vpack.c.bf16 %v677_v57, %v676_v56  ;;  %v679_v60 = vld [vmem:[#allocation8 + $0x18] sm:$0xff]  ;;  %v680_v62 = vld [vmem:[#allocation8 + $0x20] sm:$0xff]  ;;  %v681_v63 = vld [vmem:[#allocation8 + $0x28] sm:$0xff] }
  0x40   :  { %v1465_v61 = vpack.c.bf16 %v679_v60, %v678_v58  ;;  %v1468_v2 = vpack.c.bf16 %v681_v63, %v680_v62  ;;  %v682_v3 = vld [vmem:[#allocation8 + $0x30] sm:$0xff]  ;;  %v683_v4 = vld [vmem:[#allocation8 + $0x38] sm:$0xff]  ;;  %v685_v6 = vld [vmem:[#allocation8 + $0x48] sm:$0xff] }
  0x41   :  { %v525_v8 = vld [vmem:[#allocation3 + $0x30] sm:$0xff]  ;;  %v687_v14 = vld [vmem:[#allocation8 + $0x58] sm:$0xff]  ;;  %v689_v17 = vld [vmem:[#allocation8 + $0x68] sm:$0xff] }
  0x42   :  { %1277 = vmatpush3.bf16.msra.mxu0 %v1709_v10  ;;  %1301 = vmatpush3.bf16.msra.mxu1 %v1709_v10  ;;  %v691_v20 = vld [vmem:[#allocation8 + $0x78] sm:$0xff] }
  0x43   :  { %1278 = vmatprep.subr.bf16.mxu0 %v1613_v0  ;;  %1302 = vmatprep.subr.bf16.mxu1 %v1613_v0 }
  0x46   :  { %1280 = vmatpush3.bf16.msra.mxu0 %v1715_v13  ;;  %1304 = vmatpush3.bf16.msra.mxu1 %v1715_v13 }
  0x47   :  { %1281 = vmatprep.subr.bf16.mxu0 %v1613_v0  ;;  %1305 = vmatprep.subr.bf16.mxu1 %v1613_v0 }
  0x4a   :  { %1283 = vmatpush3.bf16.msra.mxu0 %v1721_v16  ;;  %1307 = vmatpush3.bf16.msra.mxu1 %v1721_v16 }
  0x4b   :  { %1284 = vmatprep.subr.bf16.mxu0 %v1613_v0  ;;  %1308 = vmatprep.subr.bf16.mxu1 %v1613_v0 }
  0x4e   :  { %1286 = vmatpush3.bf16.msra.mxu0 %v1727_v19  ;;  %1310 = vmatpush3.bf16.msra.mxu1 %v1727_v19 }
  0x4f   :  { %1287 = vmatprep.subr.bf16.mxu0 %v1613_v0  ;;  %1311 = vmatprep.subr.bf16.mxu1 %v1613_v0 }
  0x52   :  { %1289 = vmatpush3.bf16.msra.mxu0 %v1733_v22  ;;  %1313 = vmatpush3.bf16.msra.mxu1 %v1733_v22 }
  0x53   :  { %1290 = vmatprep.subr.bf16.mxu0 %v1613_v0  ;;  %1314 = vmatprep.subr.bf16.mxu1 %v1613_v0 }
  0x56   :  { %1292 = vmatpush3.bf16.msra.mxu0 %v1739_v25  ;;  %1316 = vmatpush3.bf16.msra.mxu1 %v1739_v25 }
  0x57   :  { %1317 = vmatprep.subr.bf16.mxu0 %v1613_v0  ;;  %1341 = vmatprep.subr.bf16.mxu1 %v1613_v0 }
  0x59   :  { %987 = vmatmul.mubr.f32.vlgmr.msra.gmra.mrb[0].mxu0 %v1615_v1 }
  0x5a   :  { %1319 = vmatpush3.bf16.msra.mxu0 %v1700_v5  ;;  %1056 = vmatprep.mubr.msk.f32.mxu0 %vm1614_vm0, %v1615_v1 }
  0x5b   :  { %1320 = vmatprep.subr.bf16.mxu0 %v1613_v0 }
  0x5e   :  { %1322 = vmatpush3.bf16.msra.mxu0 %v1703_v7 }
  0x5f   :  { %1323 = vmatprep.subr.bf16.mxu0 %v1613_v0 }
  0x62   :  { %1325 = vmatpush3.bf16.msra.mxu0 %v1709_v10 }
  0x63   :  { %1326 = vmatprep.subr.bf16.mxu0 %v1613_v0 }
  0x66   :  { %1328 = vmatpush3.bf16.msra.mxu0 %v1715_v13 }
  0x67   :  { %1329 = vmatprep.subr.bf16.mxu0 %v1613_v0 }
  0x6a   :  { %1331 = vmatpush3.bf16.msra.mxu0 %v1721_v16 }
  0x6b   :  { %1332 = vmatprep.subr.bf16.mxu0 %v1613_v0 }
  0x6e   :  { %1334 = vmatpush3.bf16.msra.mxu0 %v1727_v19 }
  0x6f   :  { %1335 = vmatprep.subr.bf16.mxu0 %v1613_v0 }
  0x72   :  { %1337 = vmatpush3.bf16.msra.mxu0 %v1733_v22 }
  0x73   :  { %1338 = vmatprep.subr.bf16.mxu0 %v1613_v0 }
  0x76   :  { %1340 = vmatpush3.bf16.msra.mxu0 %v1739_v25 }
  0x77   :  { %1365 = vmatprep.subr.bf16.mxu0 %v1613_v0 }
 0x12c   :  { %v148_v27 = vpop.f32.mrb[0].mxu0 }
 0x12d   :  { %v152_v28 = vadd.f32 %v148_v27, %v81_v26  ;;  %v988_v29 = vpop.f32.mrb[1].mxu0  ;;  %v769_v27 = vlaneseq }
 0x12e   :  { %v800_v29 = vld [vmem:[%s1883_s3] ss:$0 sm:$0xff]  ;;  %s1580_s3 = scalar_lea.vmem %s791_s27, 128 }
 0x12f   :  { %1494 = vtanh.f32 %v152_v28  ;;  %v770_v28 = vand.u32 127, %v769_v27  ;;  %p1581_p10 = scmp.ne.s32.totalorder %s791_s27, %s1580_s3  ;;  %p1586_p12 = scmp.lt.s32.totalorder %s1580_s3, %s1580_s3 }
 0x131   :  { %vm771_vm1 = vcmp.lt.s32.totalorder %v770_v28, 4  ;;  %p1587_p13 = por %p1586_p12, %p1585_p11 }
 0x133   :  { %p1588_p0 = pnand %p1587_p13, %p1581_p10 }
 0x139   :  { %v1495_v30 = vpop.eup %1494 }
 0x13a   :  { %1022 = vmatmul.mubr.f32.vlgmr.msra.gmra.mrb[0].mxu1 %v1495_v30 }
 0x13b   :  { %1343 = vmatpush3.bf16.msra.mxu1 %v1700_v5  ;;  %1091 = vmatprep.mubr.msk.f32.mxu1 %vm1614_vm0, %v1615_v1 }
 0x13c   :  { %1344 = vmatprep.subr.bf16.mxu1 %v1613_v0 }
 0x13f   :  { %1346 = vmatpush3.bf16.msra.mxu1 %v1703_v7 }
 0x140   :  { %1347 = vmatprep.subr.bf16.mxu1 %v1613_v0 }
 0x143   :  { %1349 = vmatpush3.bf16.msra.mxu1 %v1709_v10 }
 0x144   :  { %1350 = vmatprep.subr.bf16.mxu1 %v1613_v0 }
 0x147   :  { %1352 = vmatpush3.bf16.msra.mxu1 %v1715_v13 }
 0x148   :  { %1353 = vmatprep.subr.bf16.mxu1 %v1613_v0 }
 0x14b   :  { %1355 = vmatpush3.bf16.msra.mxu1 %v1721_v16 }
 0x14c   :  { %1356 = vmatprep.subr.bf16.mxu1 %v1613_v0 }
 0x14f   :  { %1358 = vmatpush3.bf16.msra.mxu1 %v1727_v19 }
 0x150   :  { %1359 = vmatprep.subr.bf16.mxu1 %v1613_v0 }
 0x153   :  { %1361 = vmatpush3.bf16.msra.mxu1 %v1733_v22 }
 0x154   :  { %1362 = vmatprep.subr.bf16.mxu1 %v1613_v0 }
 0x157   :  { %1364 = vmatpush3.bf16.msra.mxu1 %v1739_v25 }
 0x158   :  { %1389 = vmatprep.subr.bf16.mxu1 %v1613_v0 }
 0x20d   :  { %v222_v32 = vpop.f32.mrb[0].mxu1 }
 0x20e   :  { %v226_v33 = vadd.f32 %v222_v32, %v155_v31  ;;  %v1023_v34 = vpop.f32.mrb[1].mxu1 }
 0x210   :  { %1496 = vtanh.f32 %v226_v33 }
 0x21a   :  { %v1497_v35 = vpop.eup %1496 }
 0x21b   :  { %1057 = vmatmul.mubr.f32.vlgmr.msra.gmra.mrb[2].mxu0 %v1497_v35 }
 0x21c   :  { %1367 = vmatpush3.bf16.msra.mxu0 %v1700_v5  ;;  %1126 = vmatprep.mubr.msk.f32.mxu0 %vm1614_vm0, %v1615_v1 }
 0x21d   :  { %1368 = vmatprep.subr.bf16.mxu0 %v1613_v0 }
 0x220   :  { %1370 = vmatpush3.bf16.msra.mxu0 %v1703_v7 }
 0x221   :  { %1371 = vmatprep.subr.bf16.mxu0 %v1613_v0 }
 0x224   :  { %1373 = vmatpush3.bf16.msra.mxu0 %v1709_v10 }
 0x225   :  { %1374 = vmatprep.subr.bf16.mxu0 %v1613_v0 }
 0x228   :  { %1376 = vmatpush3.bf16.msra.mxu0 %v1715_v13 }
 0x229   :  { %1377 = vmatprep.subr.bf16.mxu0 %v1613_v0 }
 0x22c   :  { %1379 = vmatpush3.bf16.msra.mxu0 %v1721_v16 }
 0x22d   :  { %1380 = vmatprep.subr.bf16.mxu0 %v1613_v0 }
 0x230   :  { %1382 = vmatpush3.bf16.msra.mxu0 %v1727_v19 }
 0x231   :  { %1383 = vmatprep.subr.bf16.mxu0 %v1613_v0 }
 0x234   :  { %1385 = vmatpush3.bf16.msra.mxu0 %v1733_v22 }
 0x235   :  { %1386 = vmatprep.subr.bf16.mxu0 %v1613_v0 }
 0x238   :  { %1388 = vmatpush3.bf16.msra.mxu0 %v1739_v25 }
 0x239   :  { %1413 = vmatprep.subr.bf16.mxu0 %v1613_v0 }
 0x2ee   :  { %v296_v37 = vpop.f32.mrb[2].mxu0 }
 0x2ef   :  { %v300_v38 = vadd.f32 %v296_v37, %v229_v36  ;;  %v1058_v39 = vpop.f32.mrb[3].mxu0 }
 0x2f1   :  { %1498 = vtanh.f32 %v300_v38 }
 0x2fb   :  { %v1499_v40 = vpop.eup %1498 }
 0x2fc   :  { %1092 = vmatmul.mubr.f32.vlgmr.msra.gmra.mrb[2].mxu1 %v1499_v40 }
 0x2fd   :  { %1391 = vmatpush3.bf16.msra.mxu1 %v1700_v5  ;;  %1161 = vmatprep.mubr.msk.f32.mxu1 %vm1614_vm0, %v1615_v1 }
 0x2fe   :  { %1392 = vmatprep.subr.bf16.mxu1 %v1613_v0 }
 0x301   :  { %1394 = vmatpush3.bf16.msra.mxu1 %v1703_v7 }
 0x302   :  { %1395 = vmatprep.subr.bf16.mxu1 %v1613_v0 }
 0x305   :  { %1397 = vmatpush3.bf16.msra.mxu1 %v1709_v10 }
 0x306   :  { %1398 = vmatprep.subr.bf16.mxu1 %v1613_v0 }
 0x309   :  { %1400 = vmatpush3.bf16.msra.mxu1 %v1715_v13 }
 0x30a   :  { %1401 = vmatprep.subr.bf16.mxu1 %v1613_v0 }
 0x30d   :  { %1403 = vmatpush3.bf16.msra.mxu1 %v1721_v16 }
 0x30e   :  { %1404 = vmatprep.subr.bf16.mxu1 %v1613_v0 }
 0x311   :  { %1406 = vmatpush3.bf16.msra.mxu1 %v1727_v19 }
 0x312   :  { %1407 = vmatprep.subr.bf16.mxu1 %v1613_v0 }
 0x315   :  { %1409 = vmatpush3.bf16.msra.mxu1 %v1733_v22 }
 0x316   :  { %1410 = vmatprep.subr.bf16.mxu1 %v1613_v0 }
 0x319   :  { %1412 = vmatpush3.bf16.msra.mxu1 %v1739_v25 }
 0x31a   :  { %1437 = vmatprep.subr.bf16.mxu1 %v1613_v0 }
 0x3cf   :  { %v370_v42 = vpop.f32.mrb[2].mxu1 }
 0x3d0   :  { %v374_v43 = vadd.f32 %v370_v42, %v303_v41  ;;  %v1093_v44 = vpop.f32.mrb[3].mxu1 }
 0x3d2   :  { %1500 = vtanh.f32 %v374_v43 }
 0x3dc   :  { %v1501_v45 = vpop.eup %1500 }
 0x3dd   :  { %1127 = vmatmul.mubr.f32.vlgmr.msra.gmra.mrb[4].mxu0 %v1501_v45 }
 0x3de   :  { %1415 = vmatpush3.bf16.msra.mxu0 %v1700_v5  ;;  %1196 = vmatprep.mubr.msk.f32.mxu0 %vm1614_vm0, %v1615_v1 }
 0x3df   :  { %1416 = vmatprep.subr.bf16.mxu0 %v1613_v0 }
 0x3e2   :  { %1418 = vmatpush3.bf16.msra.mxu0 %v1703_v7 }
 0x3e3   :  { %1419 = vmatprep.subr.bf16.mxu0 %v1613_v0 }
 0x3e6   :  { %1421 = vmatpush3.bf16.msra.mxu0 %v1709_v10 }
 0x3e7   :  { %1422 = vmatprep.subr.bf16.mxu0 %v1613_v0 }
 0x3ea   :  { %1424 = vmatpush3.bf16.msra.mxu0 %v1715_v13 }
 0x3eb   :  { %1425 = vmatprep.subr.bf16.mxu0 %v1613_v0 }
 0x3ee   :  { %1427 = vmatpush3.bf16.msra.mxu0 %v1721_v16 }
 0x3ef   :  { %1428 = vmatprep.subr.bf16.mxu0 %v1613_v0 }
 0x3f2   :  { %1430 = vmatpush3.bf16.msra.mxu0 %v1727_v19 }
 0x3f3   :  { %1431 = vmatprep.subr.bf16.mxu0 %v1613_v0 }
 0x3f6   :  { %1433 = vmatpush3.bf16.msra.mxu0 %v1733_v22 }
 0x3f7   :  { %1434 = vmatprep.subr.bf16.mxu0 %v1613_v0 }
 0x3fa   :  { %1436 = vmatpush3.bf16.msra.mxu0 %v1739_v25 }
 0x3fb   :  { %1461 = vmatprep.subr.bf16.mxu0 %v1613_v0 }
 0x4b0   :  { %v444_v47 = vpop.f32.mrb[4].mxu0 }
 0x4b1   :  { %v448_v48 = vadd.f32 %v444_v47, %v377_v46  ;;  %v1128_v49 = vpop.f32.mrb[5].mxu0 }
 0x4b3   :  { %1502 = vtanh.f32 %v448_v48 }
 0x4bd   :  { %v1503_v50 = vpop.eup %1502 }
 0x4be   :  { %1162 = vmatmul.mubr.f32.vlgmr.msra.gmra.mrb[4].mxu1 %v1503_v50 }
 0x4bf   :  { %1439 = vmatpush3.bf16.msra.mxu1 %v1700_v5  ;;  %1231 = vmatprep.mubr.msk.f32.mxu1 %vm1614_vm0, %v1615_v1  ;;  %v1471_v5 = vpack.c.bf16 %v683_v4, %v682_v3 }
 0x4c0   :  { %1440 = vmatprep.subr.bf16.mxu1 %v1613_v0 }
 0x4c3   :  { %1442 = vmatpush3.bf16.msra.mxu1 %v1703_v7 }
 0x4c4   :  { %1443 = vmatprep.subr.bf16.mxu1 %v1613_v0 }
 0x4c7   :  { %1445 = vmatpush3.bf16.msra.mxu1 %v1709_v10 }
 0x4c8   :  { %1446 = vmatprep.subr.bf16.mxu1 %v1613_v0 }
 0x4cb   :  { %1448 = vmatpush3.bf16.msra.mxu1 %v1715_v13  ;;  %v686_v13 = vld [vmem:[#allocation8 + $0x50] sm:$0xff] }
 0x4cc   :  { %1449 = vmatprep.subr.bf16.mxu1 %v1613_v0  ;;  %v1477_v15 = vpack.c.bf16 %v687_v14, %v686_v13 }
 0x4cf   :  { %1451 = vmatpush3.bf16.msra.mxu1 %v1721_v16  ;;  %v688_v16 = vld [vmem:[#allocation8 + $0x60] sm:$0xff] }
 0x4d0   :  { %1452 = vmatprep.subr.bf16.mxu1 %v1613_v0  ;;  %v1480_v18 = vpack.c.bf16 %v689_v17, %v688_v16 }
 0x4d3   :  { %1454 = vmatpush3.bf16.msra.mxu1 %v1727_v19  ;;  %v690_v19 = vld [vmem:[#allocation8 + $0x70] sm:$0xff] }
 0x4d4   :  { %1455 = vmatprep.subr.bf16.mxu1 %v1613_v0  ;;  %v1483_v21 = vpack.c.bf16 %v691_v20, %v690_v19 }
 0x4d7   :  { %1457 = vmatpush3.bf16.msra.mxu1 %v1733_v22  ;;  %v599_v22 = vld [vmem:[#allocation3 + $0x38] sm:$0xff] }
 0x4d8   :  { %1458 = vmatprep.subr.bf16.mxu1 %v1613_v0 }
 0x4db   :  { %1460 = vmatpush3.bf16.msra.mxu1 %v1739_v25 }
 0x591   :  { %v518_v52 = vpop.f32.mrb[4].mxu1 }
 0x592   :  { %v522_v53 = vadd.f32 %v518_v52, %v451_v51  ;;  %v1163_v54 = vpop.f32.mrb[5].mxu1 }
 0x594   :  { %1504 = vtanh.f32 %v522_v53 }
 0x59e   :  { %v1505_v55 = vpop.eup %1504 }
 0x59f   :  { %1197 = vmatmul.mubr.f32.vlgmr.msra.gmra.mrb[6].mxu0 %v1505_v55 }
 0x5a0   :  { %1266 = vmatprep.mubr.msk.f32.mxu0 %vm1614_vm0, %v1615_v1  ;;  %1463 = vmatpush3.bf16.msra.mxu0 %v1462_v59  ;;  %v684_v1 = vld [vmem:[#allocation8 + $0x40] sm:$0xff] }
 0x5a1   :  { %1464 = vmatprep.subr.bf16.mxu0 %v1613_v0  ;;  %v1474_v7 = vpack.c.bf16 %v685_v6, %v684_v1 }
 0x5a4   :  { %1466 = vmatpush3.bf16.msra.mxu0 %v1465_v61 }
 0x5a5   :  { %1467 = vmatprep.subr.bf16.mxu0 %v1613_v0 }
 0x5a8   :  { %1469 = vmatpush3.bf16.msra.mxu0 %v1468_v2 }
 0x5a9   :  { %1470 = vmatprep.subr.bf16.mxu0 %v1613_v0 }
 0x5ac   :  { %1472 = vmatpush3.bf16.msra.mxu0 %v1471_v5 }
 0x5ad   :  { %1473 = vmatprep.subr.bf16.mxu0 %v1613_v0 }
 0x5b0   :  { %1475 = vmatpush3.bf16.msra.mxu0 %v1474_v7 }
 0x5b1   :  { %1476 = vmatprep.subr.bf16.mxu0 %v1613_v0 }
 0x5b4   :  { %1478 = vmatpush3.bf16.msra.mxu0 %v1477_v15 }
 0x5b5   :  { %1479 = vmatprep.subr.bf16.mxu0 %v1613_v0 }
 0x5b8   :  { %1481 = vmatpush3.bf16.msra.mxu0 %v1480_v18 }
 0x5b9   :  { %1482 = vmatprep.subr.bf16.mxu0 %v1613_v0 }
 0x5bc   :  { %1484 = vmatpush3.bf16.msra.mxu0 %v1483_v21 }
 0x672   :  { %v592_v9 = vpop.f32.mrb[6].mxu0 }
 0x673   :  { %v596_v10 = vadd.f32 %v592_v9, %v525_v8  ;;  %v1198_v11 = vpop.f32.mrb[7].mxu0 }
 0x675   :  { %1506 = vtanh.f32 %v596_v10 }
 0x67f   :  { %v1507_v12 = vpop.eup %1506 }
 0x680   :  { %1232 = vmatmul.mubr.f32.vlgmr.msra.gmra.mrb[6].mxu1 %v1507_v12 }
 0x753   :  { %v666_v23 = vpop.f32.mrb[6].mxu1 }
 0x754   :  { %v670_v24 = vadd.f32 %v666_v23, %v599_v22  ;;  %v1233_v25 = vpop.f32.mrb[7].mxu1 }
 0x756   :  { %1508 = vtanh.f32 %v670_v24 }
 0x760   :  { %v1509_v26 = vpop.eup %1508 }
 0x761   :  { %1267 = vmatmul.mubr.f32.vlgmr.msra.gmra.mrb[8].mxu0 %v1509_v26 }
 0x834   :  { %v765_v30 = vpop.f32.mrb[8].mxu0 }
 0x835   :  { %v766_v31 = vadd.f32 %v800_v29, %v765_v30  ;;  %v1268_v32 = vpop.f32.mrb[9].mxu0 }
 0x837   :  { %v772_v33 = vsel %vm771_vm1, %v766_v31, -1e+30 }
 0x838   :  { %773 = vmax.xlane.f32.xlu0 %v772_v33 }
 0x8c5   :  { %v774_v0 = vpop.xlane.xlu0 %773 }
 0x8c6   :  { %v775_v34 = vsub.f32 %v772_v33, %v774_v0 }
 0x8c8   :  { %v776_v35 = vmul.f32 1.442695, %v775_v34 }
 0x8ca   :  { %1510 = vpow2.f32 %v776_v35 }
 0x8d4   :  { %v1511_v36 = vpop.eup %1510 }
 0x8d5   :  { %778 = vadd.xlane.f32.xlu0 %v1511_v36 }
 0x962   :  { %v779_v37 = vpop.xlane.xlu0 %778 }
 0x963   :  { %1512 = vlog2.f32 %v779_v37 }
 0x96d   :  { %v1513_v38 = vpop.eup %1512 }
 0x96e   :  { %v781_v39 = vmul.f32 0.6931472, %v1513_v38 }
 0x970   :  { %v782_v40 = vsub.f32 %v775_v34, %v781_v39 }
 0x972   :  { %783 = vst [vmem:[#allocation9] sm:$0xff] %v782_v40 }
 0x973   :  { %1591 = shalt.err (!%p1588_p0)
}
 0x974   :  { %s1592_s30 = scalar_lea.hbm %s1884_s4, 128 }
 0x975   :  { %p1593_p1 = scmp.ne.s32.totalorder %s1884_s4, %s1592_s30  ;;  %p1596_p2 = scmp.lt.u32.totalorder %s1592_s30, %s1884_s4 }
 0x977   :  { %p1598_p3 = pnand %p1596_p2, %p1593_p1 }
 0x979   :  { %1601 = shalt.err (!%p1598_p3)
}
 0x97a   :  { %793 = dma.vmem_to_hbm [thread:$0]  %s791_s27, 128, %s1884_s4, [#allocation5]  }
 0x97b   :  { %1606 = dma.done.wait [#allocation5], 128  }
 0x97c   :  { %1607 = vsyncadd [#allocation5], 4294967168 }
 0x97d   :  { %797 = vsyncpa [#allocation4], 1 }
 0x97e   :  { %798 = vsyncpa [#allocation7], 1 }
 0x97f   :  { %799 = vsyncpa [#allocation5], 1 }

</bundles_post_ra>
